<compile_context>
chip_gen: v7x
topology: tpu7x:2x2x1
jax: 0.10.0
libtpu: 0.0.40
codegen_flags: <defaults>
</compile_context>

<pallas_src>
import functools
import math

import jax
import jax.numpy as jnp
from jax.experimental import pallas as pl
from jax.experimental.pallas import tpu as pltpu

_LANE = 128    # vreg lane width (last dim)
_SUBLANE = 8   # vreg sublane width (second-to-last dim)


def _round_up(x, m):
    return ((x + m - 1) // m) * m


def _pad2d(x, shape):
    """Zero-pad a 2-D array up to `shape`."""
    pr = shape[0] - x.shape[0]
    pc = shape[1] - x.shape[1]
    if pr == 0 and pc == 0:
        return x
    return jnp.pad(x, ((0, pr), (0, pc)))


def policy_net_kernel(x_ref, w1_ref, b1_ref, w2_ref, b2_ref, w3_ref, b3_ref,
                      logits_ref, probs_ref, *, num_actions):
    """Fused 3-layer MLP + softmax + epsilon fixup for one (tile_b, *) row block.

    Feature dims are padded to lane multiples.  Padded logit columns are
    exactly 0 (W3 / b3 zero-padded) and are excluded from the softmax.
    Matmuls run in the weights' dtype (f32 or bf16) with f32 accumulation;
    all elementwise post-processing is f32.
    """
    compute_dtype = w1_ref.dtype

    x = x_ref[...]                                              # (tile_b, in_p)
    h1 = jnp.dot(x, w1_ref[...], preferred_element_type=jnp.float32)
    h1 = jnp.maximum(h1 + b1_ref[...], 0.0)                     # f32 bias + ReLU
    h2 = jnp.dot(h1.astype(compute_dtype), w2_ref[...],
                 preferred_element_type=jnp.float32)
    h2 = jnp.maximum(h2 + b2_ref[...], 0.0)
    logits = jnp.dot(h2.astype(compute_dtype), w3_ref[...],
                     preferred_element_type=jnp.float32) + b3_ref[...]
    logits_ref[...] = logits                                    # padded cols == 0

    # Numerically stable softmax over the real action columns only.  The mask
    # is only emitted when the action dim was actually padded (static branch).
    act_p = logits.shape[-1]
    if num_actions < act_p:
        col = jax.lax.broadcasted_iota(jnp.int32, logits.shape, dimension=1)
        masked = jnp.where(col < num_actions, logits, -jnp.inf)
    else:
        masked = logits
    m = jnp.max(masked, axis=-1, keepdims=True)
    e = jnp.exp(masked - m)                                     # padded -> exp(-inf) = 0
    denom = jnp.sum(e, axis=-1, keepdims=True)
    probs = e * pl.reciprocal(denom, approx=False)
    # probs + (probs == 0) * 1e-8  ==  where(probs == 0, 1e-8, probs)
    probs_ref[...] = jnp.where(probs == 0.0, jnp.float32(1e-8), probs)


def policy_net_forward(state, w1, b1, w2, b2, w3, b3, *,
                       block_b=256, compute_dtype=jnp.float32):
    """Fused PolicyNet forward.

    state: (B, num_inputs) float32.  Returns (logits, probs), both
    (B, num_actions) float32.
    block_b: rows per grid step (rounded to a sublane multiple); weights stay
             resident in VMEM across the batch grid.
    compute_dtype: dtype of the matmul operands (jnp.float32 or jnp.bfloat16).
    """
    B, num_inputs = state.shape
    hidden_dim = w1.shape[1]
    num_actions = w3.shape[1]

    in_p = _round_up(num_inputs, _LANE)
    hid_p = _round_up(hidden_dim, _LANE)
    act_p = _round_up(num_actions, _LANE)

    # Batch tiling: small batches collapse to a single grid step.
    tile_b = max(_SUBLANE, min(_round_up(block_b, _SUBLANE),
                               _round_up(B, _SUBLANE)))
    B_p = _round_up(B, tile_b)
    grid_b = B_p // tile_b

    f32 = jnp.float32
    state_p = _pad2d(state.astype(f32), (B_p, in_p)).astype(compute_dtype)
    w1_p = _pad2d(w1.astype(f32), (in_p, hid_p)).astype(compute_dtype)
    w2_p = _pad2d(w2.astype(f32), (hid_p, hid_p)).astype(compute_dtype)
    w3_p = _pad2d(w3.astype(f32), (hid_p, act_p)).astype(compute_dtype)
    b1_p = _pad2d(b1.reshape(1, -1).astype(f32), (1, hid_p))
    b2_p = _pad2d(b2.reshape(1, -1).astype(f32), (1, hid_p))
    b3_p = _pad2d(b3.reshape(1, -1).astype(f32), (1, act_p))

    kernel = functools.partial(policy_net_kernel, num_actions=num_actions)

    # Weights/biases: same block for every grid step -> resident in VMEM.
    # TODO(synk): if hidden_dim is scaled to >=2048 (f32 W2 ~>=16 MiB), tile
    # the hidden/K dimension with a VMEM accumulator instead of keeping W2
    # resident (v7x VMEM is 64 MiB).
    resident = lambda shape: pl.BlockSpec(shape, lambda i: (0, 0))

    logits_p, probs_p = pl.pallas_call(
        kernel,
        out_shape=(
            jax.ShapeDtypeStruct((B_p, act_p), jnp.float32),
            jax.ShapeDtypeStruct((B_p, act_p), jnp.float32),
        ),
        grid=(grid_b,),
        in_specs=[
            pl.BlockSpec((tile_b, in_p), lambda i: (i, 0)),   # state: streamed rows
            resident((in_p, hid_p)),                          # W1
            resident((1, hid_p)),                             # b1
            resident((hid_p, hid_p)),                         # W2
            resident((1, hid_p)),                             # b2
            resident((hid_p, act_p)),                         # W3
            resident((1, act_p)),                             # b3
        ],
        out_specs=(
            pl.BlockSpec((tile_b, act_p), lambda i: (i, 0)),
            pl.BlockSpec((tile_b, act_p), lambda i: (i, 0)),
        ),
        compiler_params=pltpu.CompilerParams(
            dimension_semantics=("parallel",)),               # split rows across TCs
    )(state_p, w1_p, b1_p, w2_p, b2_p, w3_p, b3_p)

    return logits_p[:B, :num_actions], probs_p[:B, :num_actions]


def xavier_uniform(key, fan_in, fan_out, gain=1.0):
    # Matches torch.nn.init.xavier_uniform_ (gain=1): U(-a, a),
    # a = gain * sqrt(6 / (fan_in + fan_out)).
    a = gain * math.sqrt(6.0 / (fan_in + fan_out))
    return jax.random.uniform(key, (fan_in, fan_out), dtype=jnp.float32,
                              minval=-a, maxval=a)


if __name__ == "__main__":
    # Small shapes consistent with the module's forward.
    batch = 8
    num_inputs = 16
    hidden_dim = 32
    num_actions = 8

    key = jax.random.PRNGKey(0)
    k_state, k1, k2, k3, k_big = jax.random.split(key, 5)

    state = jax.random.normal(k_state, (batch, num_inputs), dtype=jnp.float32)

    # Deterministic parameter init (xavier-uniform weights, zero biases),
    # stored as (in, out) so the kernel computes x @ W + b.
    w1 = xavier_uniform(k1, num_inputs, hidden_dim)
    b1 = jnp.zeros((1, hidden_dim), jnp.float32)
    w2 = xavier_uniform(k2, hidden_dim, hidden_dim)
    b2 = jnp.zeros((1, hidden_dim), jnp.float32)
    w3 = xavier_uniform(k3, hidden_dim, num_actions)
    b3 = jnp.zeros((1, num_actions), jnp.float32)

    def ref_forward(s, cast_dtype=None):
        cast = (lambda x: x) if cast_dtype is None else (lambda x: x.astype(cast_dtype))
        h1 = jnp.maximum(
            jnp.dot(cast(s), cast(w1), preferred_element_type=jnp.float32) + b1, 0.0)
        h2 = jnp.maximum(
            jnp.dot(cast(h1), cast(w2), preferred_element_type=jnp.float32) + b2, 0.0)
        lg = jnp.dot(cast(h2), cast(w3), preferred_element_type=jnp.float32) + b3
        pr = jax.nn.softmax(lg, axis=-1)
        pr = jnp.where(pr == 0.0, 1e-8, pr)
        return lg, pr

    # --- f32 path (exact semantics of the PyTorch module) ---
    logits, probs = policy_net_forward(state, w1, b1, w2, b2, w3, b3)
    jax.block_until_ready((logits, probs))

    ref_logits, ref_probs = ref_forward(state)
    assert logits.shape == (batch, num_actions) and probs.shape == (batch, num_actions)
    assert jnp.allclose(logits, ref_logits, atol=1e-5, rtol=1e-5)
    assert jnp.allclose(probs, ref_probs, atol=1e-5, rtol=1e-5)
    assert jnp.allclose(jnp.sum(probs, axis=-1), 1.0, atol=1e-5)

    # --- larger-batch bf16-operand path (exercises the batch grid, ragged
    #     batch padding, and resident weights) ---
    big_batch = 1000
    big_state = jax.random.normal(k_big, (big_batch, num_inputs), dtype=jnp.float32)
    logits_bf, probs_bf = policy_net_forward(
        big_state, w1, b1, w2, b2, w3, b3,
        block_b=256, compute_dtype=jnp.bfloat16)
    jax.block_until_ready((logits_bf, probs_bf))

    ref_lg_bf, ref_pr_bf = ref_forward(big_state, cast_dtype=jnp.bfloat16)
    assert jnp.allclose(logits_bf, ref_lg_bf, atol=2e-2, rtol=2e-2)
    assert jnp.allclose(probs_bf, ref_pr_bf, atol=2e-2, rtol=2e-2)
    assert jnp.allclose(jnp.sum(probs_bf, axis=-1), 1.0, atol=1e-2)

    print("KERNEL_OK")
</pallas_src>

<mosaic_0001>
module attributes {stable_mosaic.version = 11 : i64} {
  func.func @policy_net_kernel(%arg0: i32, %arg1: memref<8x128xf32, #tpu.memory_space<vmem>>, %arg2: memref<128x128xf32, #tpu.memory_space<vmem>>, %arg3: memref<1x128xf32, #tpu.memory_space<vmem>>, %arg4: memref<128x128xf32, #tpu.memory_space<vmem>>, %arg5: memref<1x128xf32, #tpu.memory_space<vmem>>, %arg6: memref<128x128xf32, #tpu.memory_space<vmem>>, %arg7: memref<1x128xf32, #tpu.memory_space<vmem>>, %arg8: memref<8x128xf32, #tpu.memory_space<vmem>>, %arg9: memref<8x128xf32, #tpu.memory_space<vmem>>) attributes {dimension_semantics = [#tpu.dimension_semantics<parallel>], iteration_bounds = array<i64: 1>, scalar_prefetch = 0 : i64, scratch_operands = 0 : i64, tpu.core_type = #tpu.core_type<tc>, window_params = [{transform_indices = @transform_0, window_bounds = array<i64: 8, 128>}, {pipeline_mode = #tpu.pipeline_mode<synchronous>, transform_indices = @transform_1, window_bounds = array<i64: 128, 128>}, {pipeline_mode = #tpu.pipeline_mode<synchronous>, transform_indices = @transform_2, window_bounds = array<i64: 1, 128>}, {pipeline_mode = #tpu.pipeline_mode<synchronous>, transform_indices = @transform_3, window_bounds = array<i64: 128, 128>}, {pipeline_mode = #tpu.pipeline_mode<synchronous>, transform_indices = @transform_4, window_bounds = array<i64: 1, 128>}, {pipeline_mode = #tpu.pipeline_mode<synchronous>, transform_indices = @transform_5, window_bounds = array<i64: 128, 128>}, {pipeline_mode = #tpu.pipeline_mode<synchronous>, transform_indices = @transform_6, window_bounds = array<i64: 1, 128>}, {transform_indices = @transform_7, window_bounds = array<i64: 8, 128>}, {transform_indices = @transform_8, window_bounds = array<i64: 8, 128>}]} {
    %c0 = arith.constant 0 : index
    %c0_0 = arith.constant 0 : index
    %0 = vector.load %arg1[%c0, %c0_0] : memref<8x128xf32, #tpu.memory_space<vmem>>, vector<8x128xf32>
    %c0_1 = arith.constant 0 : index
    %c0_2 = arith.constant 0 : index
    %1 = vector.load %arg2[%c0_1, %c0_2] : memref<128x128xf32, #tpu.memory_space<vmem>>, vector<128x128xf32>
    %cst = arith.constant dense<0.000000e+00> : vector<8x128xf32>
    %2 = tpu.matmul %0, %1, %cst {dimension_numbers = #tpu.dot_dimension_numbers<[1], [0], [0], [1], [0, 0, 1, 1], [], []>} : vector<8x128xf32>, vector<128x128xf32>, vector<8x128xf32> -> vector<8x128xf32>
    %c0_3 = arith.constant 0 : index
    %c0_4 = arith.constant 0 : index
    %3 = vector.load %arg3[%c0_3, %c0_4] : memref<1x128xf32, #tpu.memory_space<vmem>>, vector<1x128xf32>
    %4 = vector.broadcast %3 : vector<1x128xf32> to vector<8x128xf32>
    %5 = arith.addf %2, %4 : vector<8x128xf32>
    %cst_5 = arith.constant 0.000000e+00 : f32
    %6 = vector.broadcast %cst_5 : f32 to vector<8x128xf32>
    %7 = arith.maximumf %5, %6 : vector<8x128xf32>
    %c0_6 = arith.constant 0 : index
    %c0_7 = arith.constant 0 : index
    %8 = vector.load %arg4[%c0_6, %c0_7] : memref<128x128xf32, #tpu.memory_space<vmem>>, vector<128x128xf32>
    %cst_8 = arith.constant dense<0.000000e+00> : vector<8x128xf32>
    %9 = tpu.matmul %7, %8, %cst_8 {dimension_numbers = #tpu.dot_dimension_numbers<[1], [0], [0], [1], [0, 0, 1, 1], [], []>} : vector<8x128xf32>, vector<128x128xf32>, vector<8x128xf32> -> vector<8x128xf32>
    %c0_9 = arith.constant 0 : index
    %c0_10 = arith.constant 0 : index
    %10 = vector.load %arg5[%c0_9, %c0_10] : memref<1x128xf32, #tpu.memory_space<vmem>>, vector<1x128xf32>
    %11 = vector.broadcast %10 : vector<1x128xf32> to vector<8x128xf32>
    %12 = arith.addf %9, %11 : vector<8x128xf32>
    %cst_11 = arith.constant 0.000000e+00 : f32
    %13 = vector.broadcast %cst_11 : f32 to vector<8x128xf32>
    %14 = arith.maximumf %12, %13 : vector<8x128xf32>
    %c0_12 = arith.constant 0 : index
    %c0_13 = arith.constant 0 : index
    %15 = vector.load %arg6[%c0_12, %c0_13] : memref<128x128xf32, #tpu.memory_space<vmem>>, vector<128x128xf32>
    %cst_14 = arith.constant dense<0.000000e+00> : vector<8x128xf32>
    %16 = tpu.matmul %14, %15, %cst_14 {dimension_numbers = #tpu.dot_dimension_numbers<[1], [0], [0], [1], [0, 0, 1, 1], [], []>} : vector<8x128xf32>, vector<128x128xf32>, vector<8x128xf32> -> vector<8x128xf32>
    %c0_15 = arith.constant 0 : index
    %c0_16 = arith.constant 0 : index
    %17 = vector.load %arg7[%c0_15, %c0_16] : memref<1x128xf32, #tpu.memory_space<vmem>>, vector<1x128xf32>
    %18 = vector.broadcast %17 : vector<1x128xf32> to vector<8x128xf32>
    %19 = arith.addf %16, %18 : vector<8x128xf32>
    %c0_17 = arith.constant 0 : index
    %c0_18 = arith.constant 0 : index
    %20 = vector.load %arg8[%c0_17, %c0_18] : memref<8x128xf32, #tpu.memory_space<vmem>>, vector<8x128xf32>
    tpu.vector_store %arg8[%c0_17, %c0_18], %19 {strides = array<i32>} : memref<8x128xf32, #tpu.memory_space<vmem>>, vector<8x128xf32>,
    %21 = tpu.iota {dimensions = array<i32: 1>} : vector<8x128xi32>
    %c8_i32 = arith.constant 8 : i32
    %22 = vector.broadcast %c8_i32 : i32 to vector<8x128xi32>
    %23 = arith.cmpi slt, %21, %22 : vector<8x128xi32>
    %cst_19 = arith.constant 0xFF800000 : f32
    %24 = vector.broadcast %cst_19 : f32 to vector<8x128xf32>
    %25 = arith.select %23, %19, %24 : vector<8x128xi1>, vector<8x128xf32>
    %cst_20 = arith.constant dense<0xFF800000> : vector<8xf32>
    %26 = vector.multi_reduction <maximumf>, %25, %cst_20 [1] : vector<8x128xf32> to vector<8xf32>
    %27 = vector.shape_cast %26 : vector<8xf32> to vector<8x1xf32>
    %28 = vector.broadcast %27 : vector<8x1xf32> to vector<8x128xf32>
    %29 = arith.subf %25, %28 : vector<8x128xf32>
    %30 = math.exp %29 : vector<8x128xf32>
    %cst_21 = arith.constant dense<0.000000e+00> : vector<8xf32>
    %31 = vector.multi_reduction <add>, %30, %cst_21 [1] : vector<8x128xf32> to vector<8xf32>
    %32 = vector.shape_cast %31 : vector<8xf32> to vector<8x1xf32>
    %33 = tpu.reciprocal %32 : vector<8x1xf32> -> vector<8x1xf32>
    %34 = vector.broadcast %33 : vector<8x1xf32> to vector<8x128xf32>
    %35 = arith.mulf %30, %34 : vector<8x128xf32>
    %cst_22 = arith.constant 0.000000e+00 : f32
    %36 = vector.broadcast %cst_22 : f32 to vector<8x128xf32>
    %37 = arith.cmpf oeq, %35, %36 : vector<8x128xf32>
    %cst_23 = arith.constant 9.99999993E-9 : f32
    %38 = vector.broadcast %cst_23 : f32 to vector<8x128xf32>
    %39 = arith.select %37, %38, %35 : vector<8x128xi1>, vector<8x128xf32>
    %c0_24 = arith.constant 0 : index
    %c0_25 = arith.constant 0 : index
    %40 = vector.load %arg9[%c0_24, %c0_25] : memref<8x128xf32, #tpu.memory_space<vmem>>, vector<8x128xf32>
    tpu.vector_store %arg9[%c0_24, %c0_25], %39 {strides = array<i32>} : memref<8x128xf32, #tpu.memory_space<vmem>>, vector<8x128xf32>,
    return
  }
  func.func @transform_0(%arg0: i32) -> (i32, i32) {
    %c0_i32 = arith.constant 0 : i32
    %c0_i32_0 = arith.constant 0 : i32
    return %arg0, %c0_i32 : i32, i32
  }
  func.func @transform_1(%arg0: i32) -> (i32, i32) {
    %c0_i32 = arith.constant 0 : i32
    %c0_i32_0 = arith.constant 0 : i32
    %c0_i32_1 = arith.constant 0 : i32
    return %c0_i32, %c0_i32_0 : i32, i32
  }
  func.func @transform_2(%arg0: i32) -> (i32, i32) {
    %c0_i32 = arith.constant 0 : i32
    %c0_i32_0 = arith.constant 0 : i32
    %c0_i32_1 = arith.constant 0 : i32
    return %c0_i32, %c0_i32_0 : i32, i32
  }
  func.func @transform_3(%arg0: i32) -> (i32, i32) {
    %c0_i32 = arith.constant 0 : i32
    %c0_i32_0 = arith.constant 0 : i32
    %c0_i32_1 = arith.constant 0 : i32
    return %c0_i32, %c0_i32_0 : i32, i32
  }
  func.func @transform_4(%arg0: i32) -> (i32, i32) {
    %c0_i32 = arith.constant 0 : i32
    %c0_i32_0 = arith.constant 0 : i32
    %c0_i32_1 = arith.constant 0 : i32
    return %c0_i32, %c0_i32_0 : i32, i32
  }
  func.func @transform_5(%arg0: i32) -> (i32, i32) {
    %c0_i32 = arith.constant 0 : i32
    %c0_i32_0 = arith.constant 0 : i32
    %c0_i32_1 = arith.constant 0 : i32
    return %c0_i32, %c0_i32_0 : i32, i32
  }
  func.func @transform_6(%arg0: i32) -> (i32, i32) {
    %c0_i32 = arith.constant 0 : i32
    %c0_i32_0 = arith.constant 0 : i32
    %c0_i32_1 = arith.constant 0 : i32
    return %c0_i32, %c0_i32_0 : i32, i32
  }
  func.func @transform_7(%arg0: i32) -> (i32, i32) {
    %c0_i32 = arith.constant 0 : i32
    %c0_i32_0 = arith.constant 0 : i32
    return %arg0, %c0_i32 : i32, i32
  }
  func.func @transform_8(%arg0: i32) -> (i32, i32) {
    %c0_i32 = arith.constant 0 : i32
    %c0_i32_0 = arith.constant 0 : i32
    return %arg0, %c0_i32 : i32, i32
  }
}

</mosaic_0001>

<bundles_post_ra>
// kernel: tpu_custom_call.1
= control target key start
LH: loop header
LB: loop body
LE: loop exit
PB: predicated region body
PF: predicated region fallthrough
CT: control target
= control target key end

     0   :  { %14 = vsyncpa [#allocation3], 0  ;;  %s977_s0 = inlined_call_operand.hbm [shape: f32[8,128], index: 0, kind: input, shape index: {}]   ;;  %s978_s1 = inlined_call_operand.hbm [shape: f32[128,128], index: 1, kind: input, shape index: {}]   ;;  %s979_s2 = inlined_call_operand.vmem [shape: f32[1,128], index: 2, kind: input, shape index: {}]   ;;  %s980_s3 = inlined_call_operand.hbm [shape: f32[128,128], index: 3, kind: input, shape index: {}]   ;;  %s981_s4 = inlined_call_operand.vmem [shape: f32[1,128], index: 4, kind: input, shape index: {}]   ;;  %s982_s5 = inlined_call_operand.hbm [shape: f32[128,128], index: 5, kind: input, shape index: {}]   ;;  %s983_s6 = inlined_call_operand.vmem [shape: f32[1,128], index: 6, kind: input, shape index: {}]   ;;  %s984_s7 = inlined_call_operand.hbm [shape: f32[8,128], index: 7, kind: output, shape index: {0}]   ;;  %s985_s8 = inlined_call_operand.hbm [shape: f32[8,128], index: 8, kind: output, shape index: {1}]  }
   0x1   :  { %15 = vsyncpa [#allocation6], 0 }
   0x2   :  { %16 = vsyncpa [#allocation9], 0 }
   0x3   :  { %17 = vsyncpa [#allocation4], 0 }
   0x4   :  { %18 = vsyncpa [#allocation12], 0  ;;  %s801_s27 = smov [#allocation5]   ;;  %s659_s9 = scalar_lea.hbm %s978_s1, 2048 }
   0x5   :  { %s34_s28 = sshll.u32 %s801_s27, 4  ;;  %p660_p0 = scmp.ne.s32.totalorder %s978_s1, %s659_s9  ;;  %s35_s28 = int_to_ptr.vmem [resolvable:$true] %s34_s28 }
   0x6   :  { %p663_p1 = scmp.lt.u32.totalorder %s659_s9, %s978_s1 }
   0x8   :  { %p665_p2 = pnand %p663_p1, %p660_p0 }
   0xa   :  { %668 = shalt.err (!%p665_p2)
}
   0xb   :  { %s669_s14 = scalar_lea.vmem %s35_s28, 2048  ;;  %p674_p4 = scmp.lt.s32.totalorder %s35_s28, %s35_s28 }
   0xc   :  { %p670_p3 = scmp.ne.s32.totalorder %s35_s28, %s669_s14  ;;  %p675_p5 = scmp.lt.s32.totalorder %s669_s14, %s669_s14 }
   0xe   :  { %p676_p6 = por %p675_p5, %p674_p4 }
  0x10   :  { %p677_p7 = pnand %p676_p6, %p670_p3 }
  0x12   :  { %680 = shalt.err (!%p677_p7)
}
  0x13   :  { %s802_s15 = smov 128   ;;  %s803_s16 = smov 8  }
  0x14   :  { %40 = dma.hbm_to_vmem [thread:$0]  %s978_s1, 2048, %s35_s28, [#allocation6], %s802_s15, %s802_s15, %s803_s16  }
  0x15   :  { %s804_s19 = smov [#allocation2]   ;;  %s805_s21 = smov [#allocation7]  }
  0x16   :  { %s25_s20 = sshll.u32 %s804_s19, 4  ;;  %s48_s22 = sshll.u32 %s805_s21, 4  ;;  %s26_s20 = int_to_ptr.vmem [resolvable:$true] %s25_s20  ;;  %s49_s22 = int_to_ptr.vmem [resolvable:$true] %s48_s22 }
  0x17   :  { %s681_s25 = scalar_lea.hbm %s977_s0, 128 }
  0x18   :  { %p682_p8 = scmp.ne.s32.totalorder %s977_s0, %s681_s25  ;;  %p685_p9 = scmp.lt.u32.totalorder %s681_s25, %s977_s0 }
  0x1a   :  { %p687_p10 = pnand %p685_p9, %p682_p8 }
  0x1c   :  { %690 = shalt.err (!%p687_p10)
}
  0x1d   :  { %s691_s1 = scalar_lea.vmem %s26_s20, 128  ;;  %p696_p12 = scmp.lt.s32.totalorder %s26_s20, %s26_s20 }
  0x1e   :  { %p692_p11 = scmp.ne.s32.totalorder %s26_s20, %s691_s1  ;;  %p697_p13 = scmp.lt.s32.totalorder %s691_s1, %s691_s1 }
  0x20   :  { %p698_p0 = por %p697_p13, %p696_p12 }
  0x22   :  { %p699_p1 = pnand %p698_p0, %p692_p11 }
  0x24   :  { %702 = shalt.err (!%p699_p1)
}
  0x25   :  { %28 = dma.hbm_to_vmem [thread:$0]  %s977_s0, 128, %s26_s20, [#allocation3]  }
  0x26   :  { %s703_s12 = scalar_lea.hbm %s980_s3, 2048 }
  0x27   :  { %p704_p2 = scmp.ne.s32.totalorder %s980_s3, %s703_s12  ;;  %p707_p3 = scmp.lt.u32.totalorder %s703_s12, %s980_s3 }
  0x29   :  { %p709_p4 = pnand %p707_p3, %p704_p2 }
  0x2b   :  { %712 = shalt.err (!%p709_p4)
}
  0x2c   :  { %s713_s19 = scalar_lea.vmem %s49_s22, 2048  ;;  %p718_p6 = scmp.lt.s32.totalorder %s49_s22, %s49_s22 }
  0x2d   :  { %p714_p5 = scmp.ne.s32.totalorder %s49_s22, %s713_s19  ;;  %p719_p7 = scmp.lt.s32.totalorder %s713_s19, %s713_s19 }
  0x2f   :  { %p720_p8 = por %p719_p7, %p718_p6 }
  0x31   :  { %p721_p9 = pnand %p720_p8, %p714_p5 }
  0x33   :  { %724 = shalt.err (!%p721_p9)
}
  0x34   :  { %54 = dma.hbm_to_vmem [thread:$0]  %s980_s3, 2048, %s49_s22, [#allocation6], %s802_s15, %s802_s15, %s803_s16  }
  0x35   :  { %s806_s21 = smov [#allocation8]   ;;  %s725_s26 = scalar_lea.hbm %s982_s5, 2048 }
  0x36   :  { %s62_s23 = sshll.u32 %s806_s21, 4  ;;  %p726_p10 = scmp.ne.s32.totalorder %s982_s5, %s725_s26  ;;  %s63_s23 = int_to_ptr.vmem [resolvable:$true] %s62_s23 }
  0x37   :  { %p729_p11 = scmp.lt.u32.totalorder %s725_s26, %s982_s5 }
  0x39   :  { %p731_p12 = pnand %p729_p11, %p726_p10 }
  0x3b   :  { %734 = shalt.err (!%p731_p12)
}
  0x3c   :  { %s735_s28 = scalar_lea.vmem %s63_s23, 2048  ;;  %p740_p0 = scmp.lt.s32.totalorder %s63_s23, %s63_s23 }
  0x3d   :  { %p736_p13 = scmp.ne.s32.totalorder %s63_s23, %s735_s28  ;;  %p741_p1 = scmp.lt.s32.totalorder %s735_s28, %s735_s28 }
  0x3f   :  { %p742_p2 = por %p741_p1, %p740_p0 }
  0x41   :  { %p743_p3 = pnand %p742_p2, %p736_p13 }
  0x43   :  { %746 = shalt.err (!%p743_p3)
}
  0x44   :  { %68 = dma.hbm_to_vmem [thread:$0]  %s982_s5, 2048, %s63_s23, [#allocation9], %s802_s15, %s802_s15, %s803_s16  }
  0x45   :  { %791 = dma.done.wait [#allocation3], 128  }
  0x46   :  { %792 = vsyncadd [#allocation3], 4294967168 }
  0x47   :  { %793 = dma.done.wait [#allocation6], 4096  }
  0x48   :  { %794 = vsyncadd [#allocation6], 4294963200 }
  0x49   :  { %795 = dma.done.wait [#allocation9], 2048  }
  0x4a   :  { %796 = vsyncadd [#allocation9], 4294965248  ;;  %v807_v0 = vmov 0.0|0.0   ;;  %vm808_vm0 = vmmov 0   ;;  %v809_v1 = vmov 0.0   ;;  %v84_v2 = vld [vmem:[#allocation5] sm:$0xff] }
  0x4b   :  { %572 = vmatprep.subr.bf16.mxu0 %v807_v0  ;;  %499 = vmatprep.mubr.msk.f32.mxu0 %vm808_vm0, %v809_v1  ;;  %v85_v3 = vld [vmem:[#allocation5 + $0x8] sm:$0xff]  ;;  %v86_v4 = vld [vmem:[#allocation5 + $0x10] sm:$0xff]  ;;  %v87_v6 = vld [vmem:[#allocation5 + $0x18] sm:$0xff] }
  0x4c   :  { %596 = vmatprep.subr.bf16.mxu1 %v807_v0  ;;  %534 = vmatprep.mubr.msk.f32.mxu1 %vm808_vm0, %v809_v1  ;;  %v573_v5 = vpack.c.bf16 %v85_v3, %v84_v2  ;;  %v576_v7 = vpack.c.bf16 %v87_v6, %v86_v4  ;;  %v88_v8 = vld [vmem:[#allocation5 + $0x20] sm:$0xff]  ;;  %v89_v9 = vld [vmem:[#allocation5 + $0x28] sm:$0xff]  ;;  %v180_v12 = vld [vmem:[#allocation7 + $0x10] sm:$0xff] }
  0x4d   :  { %v178_v10 = vld [vmem:[#allocation7] sm:$0xff]  ;;  %v179_v11 = vld [vmem:[#allocation7 + $0x8] sm:$0xff]  ;;  %v181_v13 = vld [vmem:[#allocation7 + $0x18] sm:$0xff]  ;;  %v579_v14 = vpack.c.bf16 %v89_v9, %v88_v8 }
  0x4e   :  { %574 = vmatpush3.bf16.msra.mxu0 %v573_v5  ;;  %v597_v15 = vpack.c.bf16 %v179_v11, %v178_v10  ;;  %v90_v16 = vld [vmem:[#allocation5 + $0x30] sm:$0xff]  ;;  %v91_v17 = vld [vmem:[#allocation5 + $0x38] sm:$0xff]  ;;  %v600_v18 = vpack.c.bf16 %v181_v13, %v180_v12  ;;  %v182_v19 = vld [vmem:[#allocation7 + $0x20] sm:$0xff] }
  0x4f   :  { %575 = vmatprep.subr.bf16.mxu0 %v807_v0  ;;  %v183_v20 = vld [vmem:[#allocation7 + $0x28] sm:$0xff]  ;;  %v582_v21 = vpack.c.bf16 %v91_v17, %v90_v16  ;;  %v92_v22 = vld [vmem:[#allocation5 + $0x40] sm:$0xff]  ;;  %v184_v25 = vld [vmem:[#allocation7 + $0x30] sm:$0xff] }
  0x50   :  { %598 = vmatpush3.bf16.msra.mxu1 %v597_v15  ;;  %v93_v23 = vld [vmem:[#allocation5 + $0x48] sm:$0xff]  ;;  %v603_v24 = vpack.c.bf16 %v183_v20, %v182_v19  ;;  %v185_v26 = vld [vmem:[#allocation7 + $0x38] sm:$0xff]  ;;  %v94_v28 = vld [vmem:[#allocation5 + $0x50] sm:$0xff] }
  0x51   :  { %599 = vmatprep.subr.bf16.mxu1 %v807_v0  ;;  %v585_v27 = vpack.c.bf16 %v93_v23, %v92_v22  ;;  %v95_v29 = vld [vmem:[#allocation5 + $0x58] sm:$0xff]  ;;  %v606_v30 = vpack.c.bf16 %v185_v26, %v184_v25  ;;  %v186_v31 = vld [vmem:[#allocation7 + $0x40] sm:$0xff]  ;;  %v187_v32 = vld [vmem:[#allocation7 + $0x48] sm:$0xff] }
  0x52   :  { %577 = vmatpush3.bf16.msra.mxu0 %v576_v7  ;;  %v588_v33 = vpack.c.bf16 %v95_v29, %v94_v28  ;;  %v96_v34 = vld [vmem:[#allocation5 + $0x60] sm:$0xff]  ;;  %v97_v35 = vld [vmem:[#allocation5 + $0x68] sm:$0xff]  ;;  %v609_v36 = vpack.c.bf16 %v187_v32, %v186_v31  ;;  %v188_v37 = vld [vmem:[#allocation7 + $0x50] sm:$0xff] }
  0x53   :  { %578 = vmatprep.subr.bf16.mxu0 %v807_v0  ;;  %v189_v38 = vld [vmem:[#allocation7 + $0x58] sm:$0xff]  ;;  %v591_v39 = vpack.c.bf16 %v97_v35, %v96_v34  ;;  %v98_v40 = vld [vmem:[#allocation5 + $0x70] sm:$0xff]  ;;  %v190_v43 = vld [vmem:[#allocation7 + $0x60] sm:$0xff] }
  0x54   :  { %601 = vmatpush3.bf16.msra.mxu1 %v600_v18  ;;  %v99_v41 = vld [vmem:[#allocation5 + $0x78] sm:$0xff]  ;;  %v612_v42 = vpack.c.bf16 %v189_v38, %v188_v37  ;;  %v191_v44 = vld [vmem:[#allocation7 + $0x68] sm:$0xff]  ;;  %v192_v48 = vld [vmem:[#allocation7 + $0x70] sm:$0xff] }
  0x55   :  { %602 = vmatprep.subr.bf16.mxu1 %v807_v0  ;;  %v594_v45 = vpack.c.bf16 %v99_v41, %v98_v40  ;;  %v615_v46 = vpack.c.bf16 %v191_v44, %v190_v43  ;;  %v83_v47 = vld [vmem:[#allocation2] sm:$0xff]  ;;  %v272_v51 = vld [vmem:[#allocation8] sm:$0xff]  ;;  %v273_v52 = vld [vmem:[#allocation8 + $0x8] sm:$0xff] }
  0x56   :  { %580 = vmatpush3.bf16.msra.mxu0 %v579_v14  ;;  %v193_v49 = vld [vmem:[#allocation7 + $0x78] sm:$0xff]  ;;  %v274_v53 = vld [vmem:[#allocation8 + $0x10] sm:$0xff]  ;;  %v621_v54 = vpack.c.bf16 %v273_v52, %v272_v51  ;;  %v276_v57 = vld [vmem:[#allocation8 + $0x20] sm:$0xff] }
  0x57   :  { %581 = vmatprep.subr.bf16.mxu0 %v807_v0  ;;  %v618_v50 = vpack.c.bf16 %v193_v49, %v192_v48  ;;  %v275_v55 = vld [vmem:[#allocation8 + $0x18] sm:$0xff]  ;;  %v277_v58 = vld [vmem:[#allocation8 + $0x28] sm:$0xff]  ;;  %v278_v60 = vld [vmem:[#allocation8 + $0x30] sm:$0xff] }
  0x58   :  { %604 = vmatpush3.bf16.msra.mxu1 %v603_v24  ;;  %v624_v56 = vpack.c.bf16 %v275_v55, %v274_v53  ;;  %v627_v59 = vpack.c.bf16 %v277_v58, %v276_v57  ;;  %v279_v61 = vld [vmem:[#allocation8 + $0x38] sm:$0xff]  ;;  %v280_v63 = vld [vmem:[#allocation8 + $0x40] sm:$0xff]  ;;  %v282_v3 = vld [vmem:[#allocation8 + $0x50] sm:$0xff] }
  0x59   :  { %605 = vmatprep.subr.bf16.mxu1 %v807_v0  ;;  %v630_v62 = vpack.c.bf16 %v279_v61, %v278_v60  ;;  %v283_v4 = vld [vmem:[#allocation8 + $0x58] sm:$0xff]  ;;  %v284_v6 = vld [vmem:[#allocation8 + $0x60] sm:$0xff]  ;;  %v285_v7 = vld [vmem:[#allocation8 + $0x68] sm:$0xff] }
  0x5a   :  { %583 = vmatpush3.bf16.msra.mxu0 %v582_v21  ;;  %v636_v5 = vpack.c.bf16 %v283_v4, %v282_v3  ;;  %v639_v8 = vpack.c.bf16 %v285_v7, %v284_v6  ;;  %v413_v9 = vld [vmem:[%s979_s2] ss:$0 sm:$0xff]  ;;  %v286_v14 = vld [vmem:[#allocation8 + $0x70] sm:$0xff]  ;;  %v366_v21 = vlaneseq }
  0x5b   :  { %584 = vmatprep.subr.bf16.mxu0 %v807_v0  ;;  %v287_v15 = vld [vmem:[#allocation8 + $0x78] sm:$0xff] }
  0x5c   :  { %607 = vmatpush3.bf16.msra.mxu1 %v606_v30  ;;  %v642_v16 = vpack.c.bf16 %v287_v15, %v286_v14  ;;  %v414_v17 = vld [vmem:[%s981_s4] ss:$0 sm:$0xff]  ;;  %v367_v22 = vand.u32 127, %v366_v21  ;;  %s810_s4 = smov [#allocation10]  }
  0x5d   :  { %608 = vmatprep.subr.bf16.mxu1 %v807_v0  ;;  %v415_v23 = vld [vmem:[%s983_s6] ss:$0 sm:$0xff]  ;;  %s388_s11 = sshll.u32 %s810_s4, 4  ;;  %s389_s11 = int_to_ptr.vmem [resolvable:$true] %s388_s11 }
  0x5e   :  { %586 = vmatpush3.bf16.msra.mxu0 %v585_v27  ;;  %vm368_vm1 = vcmp.lt.s32.totalorder %v367_v22, 8  ;;  %s747_s12 = scalar_lea.vmem %s389_s11, 128  ;;  %p752_p5 = scmp.lt.s32.totalorder %s389_s11, %s389_s11 }
  0x5f   :  { %587 = vmatprep.subr.bf16.mxu0 %v807_v0  ;;  %p748_p4 = scmp.ne.s32.totalorder %s389_s11, %s747_s12  ;;  %p753_p6 = scmp.lt.s32.totalorder %s747_s12, %s747_s12 }
  0x60   :  { %610 = vmatpush3.bf16.msra.mxu1 %v609_v36 }
  0x61   :  { %611 = vmatprep.subr.bf16.mxu1 %v807_v0  ;;  %p754_p7 = por %p753_p6, %p752_p5 }
  0x62   :  { %589 = vmatpush3.bf16.msra.mxu0 %v588_v33 }
  0x63   :  { %590 = vmatprep.subr.bf16.mxu0 %v807_v0  ;;  %p755_p8 = pnand %p754_p7, %p748_p4 }
  0x64   :  { %613 = vmatpush3.bf16.msra.mxu1 %v612_v42 }
  0x65   :  { %614 = vmatprep.subr.bf16.mxu1 %v807_v0 }
  0x66   :  { %592 = vmatpush3.bf16.msra.mxu0 %v591_v39 }
  0x67   :  { %593 = vmatprep.subr.bf16.mxu0 %v807_v0 }
  0x68   :  { %616 = vmatpush3.bf16.msra.mxu1 %v615_v46 }
  0x69   :  { %617 = vmatprep.subr.bf16.mxu1 %v807_v0 }
  0x6a   :  { %595 = vmatpush3.bf16.msra.mxu0 %v594_v45 }
  0x6b   :  { %620 = vmatprep.subr.bf16.mxu0 %v807_v0 }
  0x6c   :  { %619 = vmatpush3.bf16.msra.mxu1 %v618_v50 }
  0x6d   :  { %500 = vmatmul.mubr.f32.vlgmr.msra.gmra.mrb[0].mxu0 %v83_v47 }
  0x6e   :  { %569 = vmatprep.mubr.msk.f32.mxu0 %vm808_vm0, %v809_v1  ;;  %622 = vmatpush3.bf16.msra.mxu0 %v621_v54  ;;  %v281_v1 = vld [vmem:[#allocation8 + $0x48] sm:$0xff] }
  0x6f   :  { %623 = vmatprep.subr.bf16.mxu0 %v807_v0  ;;  %v633_v2 = vpack.c.bf16 %v281_v1, %v280_v63 }
  0x72   :  { %625 = vmatpush3.bf16.msra.mxu0 %v624_v56 }
  0x73   :  { %626 = vmatprep.subr.bf16.mxu0 %v807_v0 }
  0x76   :  { %628 = vmatpush3.bf16.msra.mxu0 %v627_v59 }
  0x77   :  { %629 = vmatprep.subr.bf16.mxu0 %v807_v0 }
  0x7a   :  { %631 = vmatpush3.bf16.msra.mxu0 %v630_v62 }
  0x7b   :  { %632 = vmatprep.subr.bf16.mxu0 %v807_v0 }
  0x7e   :  { %634 = vmatpush3.bf16.msra.mxu0 %v633_v2 }
  0x7f   :  { %635 = vmatprep.subr.bf16.mxu0 %v807_v0 }
  0x82   :  { %637 = vmatpush3.bf16.msra.mxu0 %v636_v5 }
  0x83   :  { %638 = vmatprep.subr.bf16.mxu0 %v807_v0 }
  0x86   :  { %640 = vmatpush3.bf16.msra.mxu0 %v639_v8 }
  0x87   :  { %641 = vmatprep.subr.bf16.mxu0 %v807_v0 }
  0x8a   :  { %643 = vmatpush3.bf16.msra.mxu0 %v642_v16 }
 0x140   :  { %v173_v10 = vpop.f32.mrb[0].mxu0 }
 0x141   :  { %v174_v11 = vadd.f32 %v413_v9, %v173_v10  ;;  %v501_v12 = vpop.f32.mrb[1].mxu0 }
 0x143   :  { %v177_v13 = vmax.f32 %v174_v11, 0.0 }
 0x145   :  { %535 = vmatmul.mubr.f32.vlgmr.msra.gmra.mrb[0].mxu1 %v177_v13 }
 0x218   :  { %v267_v18 = vpop.f32.mrb[0].mxu1 }
 0x219   :  { %v268_v19 = vadd.f32 %v414_v17, %v267_v18  ;;  %v536_v0 = vpop.f32.mrb[1].mxu1 }
 0x21b   :  { %v271_v20 = vmax.f32 %v268_v19, 0.0 }
 0x21d   :  { %570 = vmatmul.mubr.f32.vlgmr.msra.gmra.mrb[2].mxu0 %v271_v20 }
 0x2f0   :  { %v361_v24 = vpop.f32.mrb[2].mxu0 }
 0x2f1   :  { %v362_v25 = vadd.f32 %v415_v23, %v361_v24  ;;  %v571_v26 = vpop.f32.mrb[3].mxu0 }
 0x2f3   :  { %365 = vst [vmem:[#allocation10] sm:$0xff] %v362_v25  ;;  %v369_v27 = vsel %vm368_vm1, %v362_v25, -inf }
 0x2f4   :  { %370 = vmax.xlane.f32.xlu0 %v369_v27 }
 0x381   :  { %v371_v28 = vpop.xlane.xlu0 %370 }
 0x382   :  { %v372_v29 = vsub.f32 %v369_v27, %v371_v28 }
 0x384   :  { %v373_v30 = vmul.f32 1.442695, %v372_v29 }
 0x386   :  { %655 = vpow2.f32 %v373_v30 }
 0x390   :  { %v656_v31 = vpop.eup %655 }
 0x391   :  { %375 = vadd.xlane.f32.xlu0 %v656_v31 }
 0x392   :  { %758 = shalt.err (!%p755_p8)
}
 0x393   :  { %s759_s14 = scalar_lea.hbm %s984_s7, 128 }
 0x394   :  { %p760_p9 = scmp.ne.s32.totalorder %s984_s7, %s759_s14  ;;  %p763_p10 = scmp.lt.u32.totalorder %s759_s14, %s984_s7 }
 0x396   :  { %p765_p11 = pnand %p763_p10, %p760_p9 }
 0x398   :  { %768 = shalt.err (!%p765_p11)
}
 0x399   :  { %391 = dma.vmem_to_hbm [thread:$0]  %s389_s11, 128, %s984_s7, [#allocation4]  }
 0x39a   :  { %s811_s23 = smov [#allocation11]  }
 0x39b   :  { %s398_s24 = sshll.u32 %s811_s23, 4  ;;  %s399_s24 = int_to_ptr.vmem [resolvable:$true] %s398_s24 }
 0x39c   :  { %s769_s25 = scalar_lea.vmem %s399_s24, 128  ;;  %p774_p13 = scmp.lt.s32.totalorder %s399_s24, %s399_s24 }
 0x39d   :  { %p770_p12 = scmp.ne.s32.totalorder %s399_s24, %s769_s25  ;;  %p775_p0 = scmp.lt.s32.totalorder %s769_s25, %s769_s25 }
 0x39f   :  { %p776_p1 = por %p775_p0, %p774_p13 }
 0x3a1   :  { %p777_p2 = pnand %p776_p1, %p770_p12 }
 0x41e   :  { %v376_v32 = vpop.xlane.xlu0 %375 }
 0x41f   :  { %657 = vrcp.f32 %v376_v32 }
 0x429   :  { %v658_v33 = vpop.eup %657 }
 0x42a   :  { %v378_v34 = vmul.f32 %v658_v33, %v656_v31 }
 0x42c   :  { %vm379_vm2 = vcmp.eq.f32.partialorder %v378_v34, 0.0 }
 0x42d   :  { %v380_v35 = vsel %vm379_vm2, 1e-08, %v378_v34 }
 0x42e   :  { %381 = vst [vmem:[#allocation11] sm:$0xff] %v380_v35 }
 0x42f   :  { %780 = shalt.err (!%p777_p2)
}
 0x430   :  { %s781_s7 = scalar_lea.hbm %s985_s8, 128 }
 0x431   :  { %p782_p3 = scmp.ne.s32.totalorder %s985_s8, %s781_s7  ;;  %p785_p4 = scmp.lt.u32.totalorder %s781_s7, %s985_s8 }
 0x433   :  { %p787_p5 = pnand %p785_p4, %p782_p3 }
 0x435   :  { %790 = shalt.err (!%p787_p5)
}
 0x436   :  { %401 = dma.vmem_to_hbm [thread:$0]  %s399_s24, 128, %s985_s8, [#allocation12]  }
 0x437   :  { %797 = dma.done.wait [#allocation4], 128  }
 0x438   :  { %798 = vsyncadd [#allocation4], 4294967168 }
 0x439   :  { %799 = dma.done.wait [#allocation12], 128  }
 0x43a   :  { %800 = vsyncadd [#allocation12], 4294967168 }
 0x43b   :  { %408 = vsyncpa [#allocation3], 1 }
 0x43c   :  { %409 = vsyncpa [#allocation6], 1 }
 0x43d   :  { %410 = vsyncpa [#allocation9], 1 }
 0x43e   :  { %411 = vsyncpa [#allocation4], 1 }
 0x43f   :  { %412 = vsyncpa [#allocation12], 1 }

</bundles_post_ra>
